<compile_context>
chip_gen: v7x
topology: tpu7x:2x2x1
jax: 0.10.0
libtpu: 0.0.40
codegen_flags: <defaults>
</compile_context>

<pallas_src>
import functools

import jax
import jax.numpy as jnp
import numpy as np
from jax.experimental import pallas as pl
from jax.experimental.pallas import tpu as pltpu


def _round_up(v, m):
    return ((v + m - 1) // m) * m


def _tile_bytes(rows, cols, itemsize):
    """VMEM footprint of a (rows, cols) tile after (8, 128) layout padding."""
    return _round_up(max(int(rows), 1), 8) * _round_up(max(int(cols), 1), 128) * itemsize


def _vmem_estimate_bytes(nb, L, C_in, C_out, C_out_p, K, dilation, compute_itemsize):
    """Rough per-grid-step VMEM footprint (pipelined buffers + scratch + temps)."""
    pad = (K - 1) * dilation
    NL = nb * L
    # double-buffered pipelined operands (input tile, output tile, weights, biases)
    pipelined = 2 * (_tile_bytes(nb * L, C_in, 4)
                     + _tile_bytes(nb * L, C_out, 4)
                     + _tile_bytes(K * C_in, 2 * C_out_p, compute_itemsize)
                     + _tile_bytes(1, 2 * C_out_p, 4)
                     + _tile_bytes(K * C_out_p, C_out_p, compute_itemsize)
                     + _tile_bytes(1, C_out_p, 4))
    # persistent scratch: causally zero-padded activation slabs
    scratch = (_tile_bytes(nb * (L + pad), C_in, compute_itemsize)
               + _tile_bytes(nb * (L + pad), C_out_p, compute_itemsize))
    # live temporaries: im2col(x), fused conv1+downsample pre-act, h, conv2 acc, y
    live = (_tile_bytes(NL, K * C_in, compute_itemsize)
            + _tile_bytes(NL, 2 * C_out_p, 4)
            + 3 * _tile_bytes(NL, C_out_p, 4))
    return pipelined + scratch + live


def temporal_block_kernel(x_ref, w1d_ref, b1d_ref, w2_ref, b2_ref, out_ref,
                          xpad_ref, hpad_ref,
                          *, K, dilation, NB, L, C_in, C_out, C_out_p):
    """One batch tile per grid step; the whole residual block fused in-kernel.

    x_ref   : (NB, L, C_in)              unpadded input tile
    w1d_ref : (K*C_in, 2*C_out_p)        fused conv1-im2col + 1x1-downsample weight
    b1d_ref : (1, 2*C_out_p)             fused conv1/downsample biases
    w2_ref  : (K*C_out_p, C_out_p)       conv2 tap-major weight (sliced per tap)
    b2_ref  : (1, C_out_p)               conv2 bias
    out_ref : (NB, L, C_out)             logical (unpadded) output tile
    xpad_ref: (NB, L+pad, C_in)   VMEM   causally zero-padded x slab
    hpad_ref: (NB, L+pad, C_out_p) VMEM  causally zero-padded conv1 output slab
    """
    NL = NB * L
    pad = (K - 1) * dilation
    cdtype = xpad_ref.dtype            # f32, or bf16 when mxu_bf16

    def dot32(a, b):
        return jnp.dot(a, b, preferred_element_type=jnp.float32)

    # ---- stage x into a causally zero-padded scratch slab --------------------
    # The zero prefix is written every step (scratch is per-core and not
    # guaranteed initialized); taps are static slices — no per-tap zeros+concat.
    if pad:
        xpad_ref[:, :pad, :] = jnp.zeros((NB, pad, C_in), cdtype)
    xpad_ref[:, pad:, :] = x_ref[...].astype(cdtype)

    # ---- conv1 + 1x1 downsample fused into ONE MXU matmul ---------------------
    taps = [xpad_ref[:, j * dilation:j * dilation + L, :] for j in range(K)]
    im2col_x = jnp.concatenate(taps, axis=-1).reshape(NL, K * C_in)
    hr = dot32(im2col_x, w1d_ref[...]) + b1d_ref[...]       # (NL, 2*C_out_p) f32
    h = jnp.maximum(hr[:, :C_out_p], 0.0)                   # conv1 -> ReLU
    res = hr[:, C_out_p:]                                    # downsample(x) + bias
    # dropout1: identity at inference

    # ---- conv2: K accumulating per-tap matmuls (no im2col temp) --------------
    if pad:
        hpad_ref[:, :pad, :] = jnp.zeros((NB, pad, C_out_p), cdtype)
    hpad_ref[:, pad:, :] = h.astype(cdtype).reshape(NB, L, C_out_p)
    acc = jnp.zeros((NL, C_out_p), jnp.float32)
    for j in range(K):                                       # static unroll
        tap = hpad_ref[:, j * dilation:j * dilation + L, :].reshape(NL, C_out_p)
        acc = acc + dot32(tap, w2_ref[j * C_out_p:(j + 1) * C_out_p, :])
    o = jnp.maximum(acc + b2_ref[...], 0.0)                  # conv2 -> ReLU
    # dropout2: identity at inference

    # ---- residual add + store only the logical channels -----------------------
    y = o + res                                              # (NL, C_out_p) f32
    out_ref[...] = y.reshape(NB, L, C_out_p)[:, :, :C_out]


def temporal_block(x_nlc, w1_t, b1, w2_t, b2, wd_t, bd, *,
                   kernel_size, dilation, batch_tile=None, mxu_bf16=False,
                   vmem_ceiling_bytes=48 * 1024 * 1024):
    """x_nlc: (N, L, C_in).  w1_t: (K, C_in, C_out), w2_t: (K, C_out, C_out),
    wd_t: (C_in, C_out), biases: (C_out,).  Returns (N, L, C_out) float32.

    vmem_ceiling_bytes defaults to a v7x-safe 48 MiB; raise toward ~100 MiB on
    v5e/v6e (128 MiB physical VMEM) for larger tiles.
    """
    N, L, C_in = x_nlc.shape
    K = kernel_size
    C_out = w1_t.shape[2]
    C_out_p = _round_up(C_out, 128)
    pad_c = C_out_p - C_out
    pad_t = (K - 1) * dilation

    compute_dtype = jnp.bfloat16 if mxu_bf16 else jnp.float32
    compute_itemsize = 2 if mxu_bf16 else 4

    # ---- batch-tile selection: >= 2 grid steps (v7x megacore) + VMEM budget ---
    if batch_tile is not None:
        nb = batch_tile
    else:
        divisors = [d for d in range(1, N + 1) if N % d == 0]
        cands = sorted([d for d in divisors if d <= max(1, N // 2)] or [1],
                       reverse=True)
        nb = 1
        for d in cands:
            if _vmem_estimate_bytes(d, L, C_in, C_out, C_out_p, K, dilation,
                                    compute_itemsize) <= vmem_ceiling_bytes:
                nb = d
                break
    assert N % nb == 0, "batch_tile must divide N"
    grid = (N // nb,)

    # ---- fused weights (trace-time, tiny; activations never padded in HBM) ----
    w1_cat = jnp.pad(w1_t, ((0, 0), (0, 0), (0, pad_c))).reshape(K * C_in, C_out_p)
    wd_block = jnp.zeros((K * C_in, C_out_p), w1_cat.dtype)
    wd_block = wd_block.at[(K - 1) * C_in:, :].set(
        jnp.pad(wd_t, ((0, 0), (0, pad_c))))
    w1d = jnp.concatenate([w1_cat, wd_block], axis=1)        # (K*C_in, 2*C_out_p)
    w2_cat = jnp.pad(w2_t, ((0, 0), (0, pad_c), (0, pad_c))).reshape(K * C_out_p,
                                                                     C_out_p)
    b1d = jnp.concatenate([jnp.pad(b1, (0, pad_c)),
                           jnp.pad(bd, (0, pad_c))]).reshape(1, 2 * C_out_p)
    b2_p = jnp.pad(b2, (0, pad_c)).reshape(1, C_out_p)

    if mxu_bf16:
        # Cast weights ONCE at trace time (halves weight DMA and the in-kernel
        # operand footprint); accumulation/epilogue stay f32 (v5e-friendly).
        # NOTE: bf16 operands loosen accuracy vs. the f32 PyTorch reference.
        w1d = w1d.astype(jnp.bfloat16)
        w2_cat = w2_cat.astype(jnp.bfloat16)

    kern = functools.partial(temporal_block_kernel, K=K, dilation=dilation,
                             NB=nb, L=L, C_in=C_in, C_out=C_out, C_out_p=C_out_p)

    # Logical (unpadded) work for XLA's scheduler.
    flops = 2 * N * L * (K * C_in * C_out + K * C_out * C_out + C_in * C_out)
    bytes_accessed = 4 * (int(x_nlc.size) + K * C_in * C_out + K * C_out * C_out
                          + C_in * C_out + 3 * C_out + N * L * C_out)

    vmem_limit = int(min(
        max(2 * _vmem_estimate_bytes(nb, L, C_in, C_out, C_out_p, K, dilation,
                                     compute_itemsize),
            32 * 1024 * 1024),
        vmem_ceiling_bytes))

    out = pl.pallas_call(
        kern,
        out_shape=jax.ShapeDtypeStruct((N, L, C_out), jnp.float32),
        grid=grid,
        in_specs=[
            pl.BlockSpec((nb, L, C_in), lambda b: (b, 0, 0)),
            # TODO(synk): these constant-index weight/bias blocks could use
            # pipeline_mode=pl.Buffered(1) to reclaim the double-buffer VMEM.
            pl.BlockSpec((K * C_in, 2 * C_out_p), lambda b: (0, 0)),
            pl.BlockSpec((1, 2 * C_out_p), lambda b: (0, 0)),
            pl.BlockSpec((K * C_out_p, C_out_p), lambda b: (0, 0)),
            pl.BlockSpec((1, C_out_p), lambda b: (0, 0)),
        ],
        out_specs=pl.BlockSpec((nb, L, C_out), lambda b: (b, 0, 0)),
        scratch_shapes=[
            pltpu.VMEM((nb, L + pad_t, C_in), compute_dtype),
            pltpu.VMEM((nb, L + pad_t, C_out_p), compute_dtype),
        ],
        compiler_params=pltpu.CompilerParams(
            dimension_semantics=("parallel",),
            vmem_limit_bytes=vmem_limit),
        cost_estimate=pl.CostEstimate(flops=flops, transcendentals=0,
                                      bytes_accessed=bytes_accessed),
    )(x_nlc, w1d, b1d, w2_cat, b2_p)
    return out


# ---------------------------------------------------------------------------
# Parameter construction (deterministic, mirrors the PyTorch module's shapes)
# ---------------------------------------------------------------------------
def weight_norm_effective(v, g):
    """PyTorch weight_norm (dim=0): w = g * v / ||v||, norm per output channel
    over the remaining (C_in, K) dims."""
    norm = jnp.sqrt(jnp.sum(v * v, axis=(1, 2), keepdims=True))
    return (g[:, None, None] * v) / norm


def make_params(key, in_ch, out_ch, K):
    ks = jax.random.split(key, 8)
    # conv weights in PyTorch layout (C_out, C_in, K), then weight-normed.
    v1 = jax.random.normal(ks[0], (out_ch, in_ch, K), jnp.float32) * 0.3
    g1 = 1.0 + 0.1 * jax.random.normal(ks[1], (out_ch,), jnp.float32)
    b1 = 0.1 * jax.random.normal(ks[2], (out_ch,), jnp.float32)
    v2 = jax.random.normal(ks[3], (out_ch, out_ch, K), jnp.float32) * 0.3
    g2 = 1.0 + 0.1 * jax.random.normal(ks[4], (out_ch,), jnp.float32)
    b2 = 0.1 * jax.random.normal(ks[5], (out_ch,), jnp.float32)
    wd = jax.random.normal(ks[6], (out_ch, in_ch, 1), jnp.float32) * 0.3
    bd = 0.1 * jax.random.normal(ks[7], (out_ch,), jnp.float32)

    w1 = weight_norm_effective(v1, g1)          # (C_out, C_in, K)
    w2 = weight_norm_effective(v2, g2)          # (C_out, C_out, K)

    # tap-major layouts: (K, C_in, C_out) / (K, C_out, C_out), wd: (C_in, C_out)
    w1_t = jnp.transpose(w1, (2, 1, 0))
    w2_t = jnp.transpose(w2, (2, 1, 0))
    wd_t = jnp.transpose(wd[:, :, 0], (1, 0))
    return w1_t, b1, w2_t, b2, wd_t, bd


# ---------------------------------------------------------------------------
# Pure-JAX reference (same math, no Pallas) for a correctness check
# ---------------------------------------------------------------------------
def ref_causal_conv(x_nlc, w_t, b, dilation):
    N, L, _ = x_nlc.shape
    K = w_t.shape[0]
    pad = (K - 1) * dilation
    xp = jnp.pad(x_nlc, ((0, 0), (pad, 0), (0, 0)))
    out = b[None, None, :]
    for j in range(K):
        out = out + jnp.einsum('nlc,cd->nld',
                               xp[:, j * dilation:j * dilation + L, :], w_t[j])
    return out


def ref_temporal_block(x_nlc, w1_t, b1, w2_t, b2, wd_t, bd, *,
                       kernel_size, dilation):
    h = jax.nn.relu(ref_causal_conv(x_nlc, w1_t, b1, dilation))
    h = jax.nn.relu(ref_causal_conv(h, w2_t, b2, dilation))
    res = jnp.einsum('nlc,cd->nld', x_nlc, wd_t) + bd[None, None, :]
    return h + res


if __name__ == "__main__":
    # Shapes consistent with the module: batch=2, in_ch=4, out_ch=8, seq_len=16,
    # kernel_size=3, dilation=2, stride=1, dropout=0.1 (eval mode -> identity).
    N, C_in, C_out, L, K, DIL = 2, 4, 8, 16, 3, 2

    key = jax.random.PRNGKey(0)
    kx, kp = jax.random.split(key)
    x_ncl = jax.random.normal(kx, (N, C_in, L), jnp.float32)   # PyTorch NCL
    x_nlc = jnp.transpose(x_ncl, (0, 2, 1))                    # kernel layout

    w1_t, b1, w2_t, b2, wd_t, bd = make_params(kp, C_in, C_out, K)

    out = temporal_block(x_nlc, w1_t, b1, w2_t, b2, wd_t, bd,
                         kernel_size=K, dilation=DIL)
    out = jax.block_until_ready(out)

    ref = ref_temporal_block(x_nlc, w1_t, b1, w2_t, b2, wd_t, bd,
                             kernel_size=K, dilation=DIL)
    np.testing.assert_allclose(np.asarray(out), np.asarray(ref),
                               rtol=1e-5, atol=1e-5)

    assert out.shape == (N, L, C_out)
    print("KERNEL_OK")
</pallas_src>

<mosaic_0001>
module attributes {stable_mosaic.version = 11 : i64} {
  func.func @temporal_block_kernel(%arg0: i32, %arg1: memref<1x16x4xf32, #tpu.memory_space<vmem>>, %arg2: memref<12x256xf32, #tpu.memory_space<vmem>>, %arg3: memref<1x256xf32, #tpu.memory_space<vmem>>, %arg4: memref<384x128xf32, #tpu.memory_space<vmem>>, %arg5: memref<1x128xf32, #tpu.memory_space<vmem>>, %arg6: memref<1x16x8xf32, #tpu.memory_space<vmem>>, %arg7: memref<1x20x4xf32, #tpu.memory_space<vmem>>, %arg8: memref<1x20x128xf32, #tpu.memory_space<vmem>>) attributes {dimension_semantics = [#tpu.dimension_semantics<parallel>], iteration_bounds = array<i64: 2>, scalar_prefetch = 0 : i64, scratch_operands = 2 : i64, tpu.core_type = #tpu.core_type<tc>, window_params = [{transform_indices = @transform_0, window_bounds = array<i64: 1, 16, 4>}, {pipeline_mode = #tpu.pipeline_mode<synchronous>, transform_indices = @transform_1, window_bounds = array<i64: 12, 256>}, {pipeline_mode = #tpu.pipeline_mode<synchronous>, transform_indices = @transform_2, window_bounds = array<i64: 1, 256>}, {pipeline_mode = #tpu.pipeline_mode<synchronous>, transform_indices = @transform_3, window_bounds = array<i64: 384, 128>}, {pipeline_mode = #tpu.pipeline_mode<synchronous>, transform_indices = @transform_4, window_bounds = array<i64: 1, 128>}, {transform_indices = @transform_5, window_bounds = array<i64: 1, 16, 8>}]} {
    %cst = arith.constant 0.000000e+00 : f32
    %0 = vector.broadcast %cst : f32 to vector<1x4x4xf32>
    %c0 = arith.constant 0 : index
    %c0_0 = arith.constant 0 : index
    %c0_1 = arith.constant 0 : index
    %1 = vector.load %arg7[%c0, %c0_0, %c0_1] : memref<1x20x4xf32, #tpu.memory_space<vmem>>, vector<1x4x4xf32>
    tpu.vector_store %arg7[%c0, %c0_0, %c0_1], %0 {strides = array<i32>} : memref<1x20x4xf32, #tpu.memory_space<vmem>>, vector<1x4x4xf32>,
    %c0_2 = arith.constant 0 : index
    %c0_3 = arith.constant 0 : index
    %c0_4 = arith.constant 0 : index
    %2 = vector.load %arg1[%c0_2, %c0_3, %c0_4] : memref<1x16x4xf32, #tpu.memory_space<vmem>>, vector<1x16x4xf32>
    %c0_5 = arith.constant 0 : index
    %c4 = arith.constant 4 : index
    %c0_6 = arith.constant 0 : index
    %3 = vector.load %arg7[%c0_5, %c4, %c0_6] : memref<1x20x4xf32, #tpu.memory_space<vmem>>, vector<1x16x4xf32>
    tpu.vector_store %arg7[%c0_5, %c4, %c0_6], %2 {strides = array<i32>} : memref<1x20x4xf32, #tpu.memory_space<vmem>>, vector<1x16x4xf32>,
    %c0_7 = arith.constant 0 : index
    %c0_8 = arith.constant 0 : index
    %c0_9 = arith.constant 0 : index
    %4 = vector.load %arg7[%c0_7, %c0_8, %c0_9] : memref<1x20x4xf32, #tpu.memory_space<vmem>>, vector<1x16x4xf32>
    %c0_10 = arith.constant 0 : index
    %c2 = arith.constant 2 : index
    %c0_11 = arith.constant 0 : index
    %5 = vector.load %arg7[%c0_10, %c2, %c0_11] : memref<1x20x4xf32, #tpu.memory_space<vmem>>, vector<1x16x4xf32>
    %c0_12 = arith.constant 0 : index
    %c4_13 = arith.constant 4 : index
    %c0_14 = arith.constant 0 : index
    %6 = vector.load %arg7[%c0_12, %c4_13, %c0_14] : memref<1x20x4xf32, #tpu.memory_space<vmem>>, vector<1x16x4xf32>
    %7 = tpu.concatenate %4, %5, %6 in 2 : vector<1x16x4xf32>, vector<1x16x4xf32>, vector<1x16x4xf32> -> vector<1x16x12xf32>
    %8 = vector.shape_cast %7 : vector<1x16x12xf32> to vector<16x12xf32>
    %c0_15 = arith.constant 0 : index
    %c0_16 = arith.constant 0 : index
    %9 = vector.load %arg2[%c0_15, %c0_16] : memref<12x256xf32, #tpu.memory_space<vmem>>, vector<12x256xf32>
    %cst_17 = arith.constant dense<0.000000e+00> : vector<16x256xf32>
    %10 = tpu.matmul %8, %9, %cst_17 {dimension_numbers = #tpu.dot_dimension_numbers<[1], [0], [0], [1], [0, 0, 1, 1], [], []>} : vector<16x12xf32>, vector<12x256xf32>, vector<16x256xf32> -> vector<16x256xf32>
    %c0_18 = arith.constant 0 : index
    %c0_19 = arith.constant 0 : index
    %11 = vector.load %arg3[%c0_18, %c0_19] : memref<1x256xf32, #tpu.memory_space<vmem>>, vector<1x256xf32>
    %12 = vector.broadcast %11 : vector<1x256xf32> to vector<16x256xf32>
    %13 = arith.addf %10, %12 : vector<16x256xf32>
    %14 = vector.extract_strided_slice %13 {offsets = [0, 0], sizes = [16, 128], strides = [1, 1]} : vector<16x256xf32> to vector<16x128xf32>
    %cst_20 = arith.constant 0.000000e+00 : f32
    %15 = vector.broadcast %cst_20 : f32 to vector<16x128xf32>
    %16 = arith.maximumf %14, %15 : vector<16x128xf32>
    %17 = vector.extract_strided_slice %13 {offsets = [0, 128], sizes = [16, 128], strides = [1, 1]} : vector<16x256xf32> to vector<16x128xf32>
    %cst_21 = arith.constant 0.000000e+00 : f32
    %18 = vector.broadcast %cst_21 : f32 to vector<1x4x128xf32>
    %c0_22 = arith.constant 0 : index
    %c0_23 = arith.constant 0 : index
    %c0_24 = arith.constant 0 : index
    %19 = vector.load %arg8[%c0_22, %c0_23, %c0_24] : memref<1x20x128xf32, #tpu.memory_space<vmem>>, vector<1x4x128xf32>
    tpu.vector_store %arg8[%c0_22, %c0_23, %c0_24], %18 {strides = array<i32>} : memref<1x20x128xf32, #tpu.memory_space<vmem>>, vector<1x4x128xf32>,
    %20 = vector.shape_cast %16 : vector<16x128xf32> to vector<1x16x128xf32>
    %c0_25 = arith.constant 0 : index
    %c4_26 = arith.constant 4 : index
    %c0_27 = arith.constant 0 : index
    %21 = vector.load %arg8[%c0_25, %c4_26, %c0_27] : memref<1x20x128xf32, #tpu.memory_space<vmem>>, vector<1x16x128xf32>
    tpu.vector_store %arg8[%c0_25, %c4_26, %c0_27], %20 {strides = array<i32>} : memref<1x20x128xf32, #tpu.memory_space<vmem>>, vector<1x16x128xf32>,
    %cst_28 = arith.constant 0.000000e+00 : f32
    %22 = vector.broadcast %cst_28 : f32 to vector<16x128xf32>
    %c0_29 = arith.constant 0 : index
    %c0_30 = arith.constant 0 : index
    %c0_31 = arith.constant 0 : index
    %23 = vector.load %arg8[%c0_29, %c0_30, %c0_31] : memref<1x20x128xf32, #tpu.memory_space<vmem>>, vector<1x16x128xf32>
    %24 = vector.shape_cast %23 : vector<1x16x128xf32> to vector<16x128xf32>
    %c0_32 = arith.constant 0 : index
    %c0_33 = arith.constant 0 : index
    %25 = vector.load %arg4[%c0_32, %c0_33] : memref<384x128xf32, #tpu.memory_space<vmem>>, vector<128x128xf32>
    %cst_34 = arith.constant dense<0.000000e+00> : vector<16x128xf32>
    %26 = tpu.matmul %24, %25, %cst_34 {dimension_numbers = #tpu.dot_dimension_numbers<[1], [0], [0], [1], [0, 0, 1, 1], [], []>} : vector<16x128xf32>, vector<128x128xf32>, vector<16x128xf32> -> vector<16x128xf32>
    %27 = arith.addf %22, %26 : vector<16x128xf32>
    %c0_35 = arith.constant 0 : index
    %c2_36 = arith.constant 2 : index
    %c0_37 = arith.constant 0 : index
    %28 = vector.load %arg8[%c0_35, %c2_36, %c0_37] : memref<1x20x128xf32, #tpu.memory_space<vmem>>, vector<1x16x128xf32>
    %29 = vector.shape_cast %28 : vector<1x16x128xf32> to vector<16x128xf32>
    %c128 = arith.constant 128 : index
    %c0_38 = arith.constant 0 : index
    %30 = vector.load %arg4[%c128, %c0_38] : memref<384x128xf32, #tpu.memory_space<vmem>>, vector<128x128xf32>
    %cst_39 = arith.constant dense<0.000000e+00> : vector<16x128xf32>
    %31 = tpu.matmul %29, %30, %cst_39 {dimension_numbers = #tpu.dot_dimension_numbers<[1], [0], [0], [1], [0, 0, 1, 1], [], []>} : vector<16x128xf32>, vector<128x128xf32>, vector<16x128xf32> -> vector<16x128xf32>
    %32 = arith.addf %27, %31 : vector<16x128xf32>
    %c0_40 = arith.constant 0 : index
    %c4_41 = arith.constant 4 : index
    %c0_42 = arith.constant 0 : index
    %33 = vector.load %arg8[%c0_40, %c4_41, %c0_42] : memref<1x20x128xf32, #tpu.memory_space<vmem>>, vector<1x16x128xf32>
    %34 = vector.shape_cast %33 : vector<1x16x128xf32> to vector<16x128xf32>
    %c256 = arith.constant 256 : index
    %c0_43 = arith.constant 0 : index
    %35 = vector.load %arg4[%c256, %c0_43] : memref<384x128xf32, #tpu.memory_space<vmem>>, vector<128x128xf32>
    %cst_44 = arith.constant dense<0.000000e+00> : vector<16x128xf32>
    %36 = tpu.matmul %34, %35, %cst_44 {dimension_numbers = #tpu.dot_dimension_numbers<[1], [0], [0], [1], [0, 0, 1, 1], [], []>} : vector<16x128xf32>, vector<128x128xf32>, vector<16x128xf32> -> vector<16x128xf32>
    %37 = arith.addf %32, %36 : vector<16x128xf32>
    %c0_45 = arith.constant 0 : index
    %c0_46 = arith.constant 0 : index
    %38 = vector.load %arg5[%c0_45, %c0_46] : memref<1x128xf32, #tpu.memory_space<vmem>>, vector<1x128xf32>
    %39 = vector.broadcast %38 : vector<1x128xf32> to vector<16x128xf32>
    %40 = arith.addf %37, %39 : vector<16x128xf32>
    %cst_47 = arith.constant 0.000000e+00 : f32
    %41 = vector.broadcast %cst_47 : f32 to vector<16x128xf32>
    %42 = arith.maximumf %40, %41 : vector<16x128xf32>
    %43 = arith.addf %42, %17 : vector<16x128xf32>
    %44 = vector.shape_cast %43 : vector<16x128xf32> to vector<1x16x128xf32>
    %45 = vector.extract_strided_slice %44 {offsets = [0, 0, 0], sizes = [1, 16, 8], strides = [1, 1, 1]} : vector<1x16x128xf32> to vector<1x16x8xf32>
    %c0_48 = arith.constant 0 : index
    %c0_49 = arith.constant 0 : index
    %c0_50 = arith.constant 0 : index
    %46 = vector.load %arg6[%c0_48, %c0_49, %c0_50] : memref<1x16x8xf32, #tpu.memory_space<vmem>>, vector<1x16x8xf32>
    tpu.vector_store %arg6[%c0_48, %c0_49, %c0_50], %45 {strides = array<i32>} : memref<1x16x8xf32, #tpu.memory_space<vmem>>, vector<1x16x8xf32>,
    return
  }
  func.func @transform_0(%arg0: i32) -> (i32, i32, i32) {
    %c0_i32 = arith.constant 0 : i32
    %c0_i32_0 = arith.constant 0 : i32
    %c0_i32_1 = arith.constant 0 : i32
    return %arg0, %c0_i32, %c0_i32_0 : i32, i32, i32
  }
  func.func @transform_1(%arg0: i32) -> (i32, i32) {
    %c0_i32 = arith.constant 0 : i32
    %c0_i32_0 = arith.constant 0 : i32
    %c0_i32_1 = arith.constant 0 : i32
    return %c0_i32, %c0_i32_0 : i32, i32
  }
  func.func @transform_2(%arg0: i32) -> (i32, i32) {
    %c0_i32 = arith.constant 0 : i32
    %c0_i32_0 = arith.constant 0 : i32
    %c0_i32_1 = arith.constant 0 : i32
    return %c0_i32, %c0_i32_0 : i32, i32
  }
  func.func @transform_3(%arg0: i32) -> (i32, i32) {
    %c0_i32 = arith.constant 0 : i32
    %c0_i32_0 = arith.constant 0 : i32
    %c0_i32_1 = arith.constant 0 : i32
    return %c0_i32, %c0_i32_0 : i32, i32
  }
  func.func @transform_4(%arg0: i32) -> (i32, i32) {
    %c0_i32 = arith.constant 0 : i32
    %c0_i32_0 = arith.constant 0 : i32
    %c0_i32_1 = arith.constant 0 : i32
    return %c0_i32, %c0_i32_0 : i32, i32
  }
  func.func @transform_5(%arg0: i32) -> (i32, i32, i32) {
    %c0_i32 = arith.constant 0 : i32
    %c0_i32_0 = arith.constant 0 : i32
    %c0_i32_1 = arith.constant 0 : i32
    return %arg0, %c0_i32, %c0_i32_0 : i32, i32, i32
  }
}

</mosaic_0001>

<bundles_post_ra>
// kernel: tpu_custom_call.1
= control target key start
LH: loop header
LB: loop body
LE: loop exit
PB: predicated region body
PF: predicated region fallthrough
CT: control target
= control target key end

     0   :  { %10 = vsyncpa [#allocation5], 0  ;;  %s1136_s18 = smov 0   ;;  %s1242_s0 = inlined_call_operand.vmem [shape: f32[2,16,4], index: 0, kind: input, shape index: {}]   ;;  %s1243_s1 = inlined_call_operand.vmem [shape: f32[12,256], index: 1, kind: input, shape index: {}]   ;;  %s1244_s2 = inlined_call_operand.vmem [shape: f32[1,256], index: 2, kind: input, shape index: {}]   ;;  %s1245_s3 = inlined_call_operand.hbm [shape: f32[384,128], index: 3, kind: input, shape index: {}]   ;;  %s1246_s4 = inlined_call_operand.vmem [shape: f32[1,128], index: 4, kind: input, shape index: {}]   ;;  %s1247_s5 = inlined_call_operand.vmem [shape: f32[2,16,8], index: 5, kind: output, shape index: {}]  }
   0x1 LB: > { %s1142_s19 = sadd.s32 4294967295, %s1097_s18   ;;  %p751_p0 = scmp.ge.s32.totalorder %s1097_s18, 1  ;;  %s1097_s18 = sphi %s1136_s18, %s16_s18  }
   0x2   : > { %p157_p1 = scmp.lt.s32.totalorder %s1097_s18, 3  ;;  %s1099_s20 = smov [#allocation4]  }
   0x3   : > { %s175_s21 = sshll.u32 %s1099_s20, 4  ;;  %p1248_p3 = scmp.eq.s32.totalorder %s1142_s19, 0  ;;  %s176_s21 = int_to_ptr.vmem [resolvable:$true] %s175_s21 }
   0x4   : > { %p1146_p2 = pnand %p751_p0, %p157_p1  ;;  %s1059_s26 = scalar_lea.hbm %s1245_s3, 6144 }
   0x5   : > { %p1060_p6 = scmp.ne.s32.totalorder %s1245_s3, %s1059_s26  ;;  %p1066_p10 = scmp.lt.u32.totalorder %s1059_s26, %s1245_s3 }
   0x6   : > { %s1250_s22 = scalar_select %p1146_p2, 1, 0 }
   0x7   : > { %p1038_p4 = pneg %p1146_p2 }
   0x9   : > { %p1155_p5 = pnand %p1248_p3, %p1038_p4 }
   0xb   : > { %p1061_p7 = pneg %p1155_p5 }
   0xd   : > { %p1062_p8 = pnand %p1061_p7, %p1060_p6 }
   0xf   : > { %p1063_p9 = pneg %p1062_p8 }
  0x11   : > { %p1068_p11 = pnand %p1066_p10, %p1063_p9 }
  0x13   : > { %1071 = shalt.err (!%p1068_p11)
}
  0x14   : > { %s1072_s6 = scalar_lea.vmem %s176_s21, 6144  ;;  %p1080_p1 = scmp.lt.s32.totalorder %s176_s21, %s176_s21 }
  0x15   : > { %p1073_p12 = scmp.ne.s32.totalorder %s176_s21, %s1072_s6  ;;  %p1081_p4 = scmp.lt.s32.totalorder %s1072_s6, %s1072_s6 }
  0x17   : > { %p1075_p13 = pnand %p1073_p12, %p1061_p7  ;;  %p1082_p3 = por %p1081_p4, %p1080_p1 }
  0x19   : > { %p1076_p0 = pneg %p1075_p13 }
  0x1b   : > { %p1083_p2 = pnand %p1082_p3, %p1076_p0 }
  0x1d   : > { %1086 = shalt.err (!%p1083_p2)
}
  0x1e   : > { %s1100_s7 = smov 128   ;;  %s1101_s8 = smov 8  }
  0x1f   : > { %1041 = dma.hbm_to_vmem [thread:$0]  (!%p1155_p5), %s1245_s3, 6144, %s176_s21, [#allocation5], %s1100_s7, %s1100_s7, %s1101_s8  }
  0x20   : > { %p1252_p6 = scmp.ne.s32.totalorder %s1250_s22, 0 }
  0x21   : > { %p1253_p8 = scmp.eq.s32.totalorder (!%p1252_p6), %s1142_s19, 0 }
  0x22   : > { %202 = sbr.rel (%p1252_p6) target bundleno = 659 (0x293), region = 40 }
  0x29   : > { %1092 = dma.done.wait (%p1253_p8), [#allocation5], 6144   ;;  %p1254_p7 = pmov %p1253_p8 }
  0x2a   : > { %p230_p2 = scmp.lt.s32.totalorder %s1142_s19, 1  ;;  %vm240_vm0 = vcmask 27648   ;;  %v1102_v0 = vmov 0.0   ;;  %vm297_vm1 = vcmask 1043456   ;;  %vm244_vm2 = vcmask 31744   ;;  %v275_v3 = vld [vmem:[%s1243_s1 + $0x8] sm:$0xff] }
  0x2b   : > { %1094 = vsyncadd (%p1254_p7), [#allocation5], 4294961152  ;;  %241 = vst.msk [vmem:[#allocation2] sm:$0xf] %vm240_vm0, %v1102_v0  ;;  %368 = vmatprep.mubr.f32.mxu0 %v1102_v0  ;;  %vm1103_vm3 = vmmov 1   ;;  %v274_v5 = vld [vmem:[%s1243_s1] sm:$0xff] }
  0x2c   : > { %383 = vst [vmem:[#allocation3] sm:$0xf] %v1102_v0  ;;  %s1256_s19 = smov (!%p230_p2, %s1142_s19), 1  ;;  %vm929_vm4 = vmpackc.low %vm297_vm1, %vm1103_vm3  ;;  %v277_v4 = vld [vmem:[%s1243_s1 + $0x18] sm:$0xf]  ;;  %v388_v9 = vld [vmem:[#allocation4] sm:$0xff] }
  0x2d   : > { %s767_s11 = sshll.u32 %s1256_s19, 4  ;;  %v276_v6 = vld [vmem:[%s1243_s1 + $0x10] sm:$0xf]  ;;  %v928_v7 = vpack.c.bf16 %v277_v4, %v275_v3  ;;  %v389_v10 = vld [vmem:[#allocation4 + $0x8] sm:$0xff]  ;;  %v390_v14 = vld [vmem:[#allocation4 + $0x10] sm:$0xff]  ;;  %s1104_s25 = smov 4  }
  0x2e   : > { %s234_s14 = scalar_lea.vmem %s1242_s0, %s767_s11  ;;  %v931_v8 = vpack.c.bf16 %v276_v6, %v274_v5  ;;  %v406_v11 = vld [vmem:[#allocation4 + $0x80] sm:$0xff]  ;;  %v966_v12 = vpack.c.bf16 %v389_v10, %v388_v9  ;;  %v407_v13 = vld [vmem:[#allocation4 + $0x88] sm:$0xff]  ;;  %v391_v15 = vld [vmem:[#allocation4 + $0x18] sm:$0xff]  ;;  %s1105_s26 = smov 8   ;;  %vm271_vm5 = vcmask 64512   ;;  %vm290_vm6 = vcmask 97280  }
  0x2f   : > { %v242_v1 = vld [vmem:[%s234_s14] sm:$0xff]  ;;  %v243_v2 = vld [vmem:[%s234_s14 + $0x8] sm:$0xff]  ;;  %930 = vmatprep.subr.msk.bf16.mxu0 %vm929_vm4, %v928_v7  ;;  %v934_v16 = vpack.c.bf16 %v407_v13, %v406_v11  ;;  %v970_v17 = vpack.c.bf16 %v391_v15, %v390_v14  ;;  %v392_v20 = vld [vmem:[#allocation4 + $0x20] sm:$0xff]  ;;  %v280_v10 = vlaneseq  ;;  %s239_s8 = scalar_lea.vmem %s1247_s5, %s767_s11 }
  0x30   : > { %245 = vst.msk [vmem:[#allocation2 + $0x4] sm:$0xff] %vm244_vm2, %v242_v1  ;;  %246 = vst.msk [vmem:[#allocation2 + $0xc] sm:$0xff] %vm244_vm2, %v243_v2  ;;  %933 = vmatpush1.bf16.msk.msra.mxu0 %vm929_vm4, %v931_v8  ;;  %967 = vmatprep.subr.bf16.mxu1 %v966_v12  ;;  %v393_v23 = vld [vmem:[#allocation4 + $0x28] sm:$0xff]  ;;  %v394_v25 = vld [vmem:[#allocation4 + $0x30] sm:$0xff] }
  0x31   : > { %935 = vmatprep.subr.bf16.mxu0 %v934_v16  ;;  %969 = vmatpush3.bf16.msra.mxu1 %v966_v12  ;;  %v974_v24 = vpack.c.bf16 %v393_v23, %v392_v20  ;;  %v395_v26 = vld [vmem:[#allocation4 + $0x38] sm:$0xff]  ;;  %v408_v31 = vld [vmem:[#allocation4 + $0x90] sm:$0xff]  ;;  %v410_v38 = vld [vmem:[#allocation4 + $0xa0] sm:$0xff]  ;;  %v1215_v11 = vshrl.u32 %v280_v10, 7 }
  0x32   : > { %971 = vmatprep.subr.bf16.mxu1 %v970_v17  ;;  %v978_v27 = vpack.c.bf16 %v395_v26, %v394_v25  ;;  %v409_v32 = vld [vmem:[#allocation4 + $0x98] sm:$0xff]  ;;  %v411_v39 = vld [vmem:[#allocation4 + $0xa8] sm:$0xff]  ;;  %v412_v44 = vld [vmem:[#allocation4 + $0xb0] sm:$0xff] }
  0x33   : > { %v938_v36 = vpack.c.bf16 %v409_v32, %v408_v31  ;;  %v942_v42 = vpack.c.bf16 %v411_v39, %v410_v38  ;;  %v413_v45 = vld [vmem:[#allocation4 + $0xb8] sm:$0xff]  ;;  %v396_v47 = vld [vmem:[#allocation4 + $0x40] sm:$0xff]  ;;  %v397_v48 = vld [vmem:[#allocation4 + $0x48] sm:$0xff]  ;;  %v282_v12 = vsub.s32 0, %v1215_v11 }
  0x34   : > { %v946_v46 = vpack.c.bf16 %v413_v45, %v412_v44  ;;  %v982_v49 = vpack.c.bf16 %v397_v48, %v396_v47  ;;  %v414_v50 = vld [vmem:[#allocation4 + $0xc0] sm:$0xff]  ;;  %v415_v51 = vld [vmem:[#allocation4 + $0xc8] sm:$0xff]  ;;  %v398_v53 = vld [vmem:[#allocation4 + $0x50] sm:$0xff] }
  0x35   : > { %973 = vmatpush3.bf16.msra.mxu1 %v970_v17  ;;  %v950_v52 = vpack.c.bf16 %v415_v51, %v414_v50  ;;  %v399_v54 = vld [vmem:[#allocation4 + $0x58] sm:$0xff]  ;;  %v416_v56 = vld [vmem:[#allocation4 + $0xd0] sm:$0xff]  ;;  %v400_v59 = vld [vmem:[#allocation4 + $0x60] sm:$0xff]  ;;  %v286_v50 = vsub.s32 1, %v1215_v11 }
  0x36   : > { %975 = vmatprep.subr.bf16.mxu1 %v974_v24  ;;  %v986_v55 = vpack.c.bf16 %v399_v54, %v398_v53  ;;  %v417_v57 = vld [vmem:[#allocation4 + $0xd8] sm:$0xff]  ;;  %v401_v60 = vld [vmem:[#allocation4 + $0x68] sm:$0xff]  ;;  %v418_v62 = vld [vmem:[#allocation4 + $0xe0] sm:$0xff] }
  0x37   : > { %v249_v18 = vld [vmem:[#allocation2 + $0x2] sm:$0xff]  ;;  %v250_v19 = vld [vmem:[#allocation2 + $0xa] sm:$0xff]  ;;  %v954_v58 = vpack.c.bf16 %v417_v57, %v416_v56  ;;  %v990_v61 = vpack.c.bf16 %v401_v60, %v400_v59  ;;  %v419_v63 = vld [vmem:[#allocation4 + $0xe8] sm:$0xff] }
  0x38   : > { %255 = vrot.lane.b32.xlu0 %v249_v18, %s1104_s25  ;;  %257 = vrot.lane.b32.xlu1 %v250_v19, %s1104_s25  ;;  %v251_v21 = vld [vmem:[#allocation2 + $0x4] sm:$0xff]  ;;  %v252_v22 = vld [vmem:[#allocation2 + $0xc] sm:$0xff]  ;;  %v575_v8 = vld [vmem:[#allocation4 + $0x108] sm:$0xff] }
  0x39   : > { %977 = vmatpush3.bf16.msra.mxu1 %v974_v24  ;;  %v247_v30 = vld [vmem:[#allocation2] sm:$0xff]  ;;  %v248_v33 = vld [vmem:[#allocation2 + $0x8] sm:$0xff]  ;;  %v574_v7 = vld [vmem:[#allocation4 + $0x100] sm:$0xff] }
  0x3a   : > { %979 = vmatprep.subr.bf16.mxu1 %v978_v27  ;;  %v402_v1 = vld [vmem:[#allocation4 + $0x70] sm:$0xff]  ;;  %v403_v2 = vld [vmem:[#allocation4 + $0x78] sm:$0xff]  ;;  %v998_v9 = vpack.c.bf16 %v575_v8, %v574_v7  ;;  %v579_v31 = vld [vmem:[#allocation4 + $0x128] sm:$0xff] }
  0x3b   : > { %v420_v3 = vld [vmem:[#allocation4 + $0xf0] sm:$0xff]  ;;  %v994_v4 = vpack.c.bf16 %v403_v2, %v402_v1  ;;  %v421_v5 = vld [vmem:[#allocation4 + $0xf8] sm:$0xff] }
  0x3c   : > { %263 = vrot.lane.b32.xlu0 %v251_v21, %s1105_s26  ;;  %265 = vrot.lane.b32.xlu1 %v252_v22, %s1105_s26  ;;  %v962_v6 = vpack.c.bf16 %v421_v5, %v420_v3  ;;  %v1221_v13 = vld [vmem:[%s1244_s2] sm:$0x3]  ;;  %v577_v26 = vld [vmem:[#allocation4 + $0x118] sm:$0xff] }
  0x3d   : > { %981 = vmatpush3.bf16.msra.mxu1 %v978_v27  ;;  %v283_v14 = vrot.slane %v1221_v13, %v282_v12  ;;  %v576_v23 = vld [vmem:[#allocation4 + $0x110] sm:$0xff] }
  0x3e   : > { %983 = vmatprep.subr.bf16.mxu1 %v982_v49  ;;  %v1002_v27 = vpack.c.bf16 %v577_v26, %v576_v23  ;;  %v584_v39 = vld [vmem:[#allocation4 + $0x150] sm:$0xff] }
  0x3f   : > { %v588_v45 = vld [vmem:[#allocation4 + $0x170] sm:$0xff] }
  0x41   : > { %985 = vmatpush3.bf16.msra.mxu1 %v982_v49 }
  0x42   : > { %987 = vmatprep.subr.bf16.mxu1 %v986_v55 }
  0x45   : > { %989 = vmatpush3.bf16.msra.mxu1 %v986_v55  ;;  %v287_v55 = vrot.slane %v1221_v13, %v286_v50 }
  0x46   : > { %991 = vmatprep.subr.bf16.mxu1 %v990_v61 }
  0x49   : > { %993 = vmatpush3.bf16.msra.mxu1 %v990_v61 }
  0x4a   : > { %995 = vmatprep.subr.bf16.mxu1 %v994_v4 }
  0x4d   : > { %997 = vmatpush3.bf16.msra.mxu1 %v994_v4 }
  0x4e   : > { %999 = vmatprep.subr.bf16.mxu1 %v998_v9 }
  0xaa   : > { %v256_v28 = vpop.permute.xlu0 %255  ;;  %v258_v29 = vpop.permute.xlu1 %257 }
  0xab   : > { %v269_v34 = vsel %vm244_vm2, %v247_v30, %v256_v28  ;;  %v270_v40 = vsel %vm244_vm2, %v248_v33, %v258_v29  ;;  %v578_v28 = vld [vmem:[#allocation4 + $0x120] sm:$0xff]  ;;  %v580_v33 = vld [vmem:[#allocation4 + $0x130] sm:$0xff] }
  0xac   : > { %v1006_v32 = vpack.c.bf16 %v579_v31, %v578_v28 }
  0xae   : > { %v264_v35 = vpop.permute.xlu0 %263  ;;  %v266_v41 = vpop.permute.xlu1 %265 }
  0xaf   : > { %v272_v37 = vsel %vm271_vm5, %v269_v34, %v264_v35  ;;  %v273_v43 = vsel %vm271_vm5, %v270_v40, %v266_v41  ;;  %v581_v34 = vld [vmem:[#allocation4 + $0x138] sm:$0xff] }
  0xb0   : > { %762 = vmatmul.mubr.msk.f32.vlgmr.msra.gmra.mrb[0].mxu0 %vm290_vm6, %v272_v37  ;;  %v1010_v35 = vpack.c.bf16 %v581_v34, %v580_v33  ;;  %v583_v37 = vld [vmem:[#allocation4 + $0x148] sm:$0xff]  ;;  %v585_v40 = vld [vmem:[#allocation4 + $0x158] sm:$0xff] }
  0xb1   : > { %374 = vmatprep.mubr.f32.mxu0 %v1102_v0  ;;  %937 = vmatpush3.bf16.msra.mxu0 %v934_v16  ;;  %v958_v0 = vpack.c.bf16 %v419_v63, %v418_v62  ;;  %v1018_v41 = vpack.c.bf16 %v585_v40, %v584_v39 }
  0xb2   : > { %939 = vmatprep.subr.bf16.mxu0 %v938_v36 }
  0xb4   : > { %763 = vmatmul.mubr.msk.f32.gmra.mrb[2].mxu0 %vm290_vm6, %v273_v43  ;;  %v587_v43 = vld [vmem:[#allocation4 + $0x168] sm:$0xff] }
  0xb5   : > { %941 = vmatpush3.bf16.msra.mxu0 %v938_v36  ;;  %v582_v36 = vld [vmem:[#allocation4 + $0x140] sm:$0xff] }
  0xb6   : > { %943 = vmatprep.subr.bf16.mxu0 %v942_v42  ;;  %v1014_v38 = vpack.c.bf16 %v583_v37, %v582_v36 }
  0xb9   : > { %945 = vmatpush3.bf16.msra.mxu0 %v942_v42  ;;  %v586_v42 = vld [vmem:[#allocation4 + $0x160] sm:$0xff] }
  0xba   : > { %947 = vmatprep.subr.bf16.mxu0 %v946_v46  ;;  %v1022_v44 = vpack.c.bf16 %v587_v43, %v586_v42 }
  0xbd   : > { %949 = vmatpush3.bf16.msra.mxu0 %v946_v46  ;;  %v589_v46 = vld [vmem:[#allocation4 + $0x178] sm:$0xff] }
  0xbe   : > { %951 = vmatprep.subr.bf16.mxu0 %v950_v52  ;;  %v1026_v47 = vpack.c.bf16 %v589_v46, %v588_v45 }
  0xc1   : > { %953 = vmatpush3.bf16.msra.mxu0 %v950_v52  ;;  %v764_v52 = vld [vmem:[%s1246_s4] ss:$0 sm:$0xff] }
  0xc2   : > { %955 = vmatprep.subr.bf16.mxu0 %v954_v58 }
  0xc5   : > { %957 = vmatpush3.bf16.msra.mxu0 %v954_v58 }
  0xc6   : > { %959 = vmatprep.subr.bf16.mxu0 %v958_v0 }
  0xc9   : > { %961 = vmatpush3.bf16.msra.mxu0 %v958_v0 }
  0xca   : > { %963 = vmatprep.subr.bf16.mxu0 %v962_v6 }
  0xcd   : > { %965 = vmatpush3.bf16.msra.mxu0 %v962_v6 }
 0x183   : > { %v370_v15 = vpop.f32.mrb[0].mxu0 }
 0x184   : > { %v371_v16 = vadd.f32 %v370_v15, %v283_v14  ;;  %v1224_v17 = vpop.f32.mrb[1].mxu0 }
 0x185   : > { %v373_v61 = vadd.f32 %v1224_v17, %v287_v55 }
 0x186   : > { %v381_v18 = vmax.f32 %v371_v16, 0.0 }
 0x187   : > { %v376_v19 = vpop.f32.mrb[2].mxu0 }
 0x188   : > { %384 = vst [vmem:[#allocation3 + $0x4] sm:$0xff] %v381_v18  ;;  %v377_v20 = vadd.f32 %v376_v19, %v283_v14  ;;  %v378_v21 = vpop.f32.mrb[3].mxu0 }
 0x189   : > { %v379_v59 = vadd.f32 %v378_v21, %v287_v55 }
 0x18a   : > { %v382_v22 = vmax.f32 %v377_v20, 0.0 }
 0x18c   : > { %385 = vst [vmem:[#allocation3 + $0xc] sm:$0xff] %v382_v22 }
 0x18f   : > { %v404_v24 = vld [vmem:[#allocation3 + $0x2] sm:$0xff] }
 0x190   : > { %v386_v25 = vld [vmem:[#allocation3] sm:$0xff]  ;;  %855 = vmatprep.mubr.f32.mxu0 %v404_v24 }
 0x191   : > { %890 = vmatprep.mubr.f32.mxu1 %v386_v25 }
 0x193   : > { %v405_v29 = vld [vmem:[#allocation3 + $0xa] sm:$0xff] }
 0x194   : > { %v387_v30 = vld [vmem:[#allocation3 + $0x8] sm:$0xff]  ;;  %856 = vmatmul.mubr.f32.vlgmr.msra.gmra.mrb[4].mxu0 %v405_v29 }
 0x195   : > { %891 = vmatmul.mubr.f32.vlgmr.msra.gmra.mrb[0].mxu1 %v387_v30 }
 0x196   : > { %1001 = vmatpush3.bf16.msra.mxu1 %v998_v9  ;;  %925 = vmatprep.mubr.f32.mxu1 %v381_v18 }
 0x197   : > { %1003 = vmatprep.subr.bf16.mxu1 %v1002_v27 }
 0x19a   : > { %1005 = vmatpush3.bf16.msra.mxu1 %v1002_v27 }
 0x19b   : > { %1007 = vmatprep.subr.bf16.mxu1 %v1006_v32 }
 0x19e   : > { %1009 = vmatpush3.bf16.msra.mxu1 %v1006_v32 }
 0x19f   : > { %1011 = vmatprep.subr.bf16.mxu1 %v1010_v35 }
 0x1a2   : > { %1013 = vmatpush3.bf16.msra.mxu1 %v1010_v35 }
 0x1a3   : > { %1015 = vmatprep.subr.bf16.mxu1 %v1014_v38 }
 0x1a6   : > { %1017 = vmatpush3.bf16.msra.mxu1 %v1014_v38 }
 0x1a7   : > { %1019 = vmatprep.subr.bf16.mxu1 %v1018_v41 }
 0x1aa   : > { %1021 = vmatpush3.bf16.msra.mxu1 %v1018_v41 }
 0x1ab   : > { %1023 = vmatprep.subr.bf16.mxu1 %v1022_v44 }
 0x1ae   : > { %1025 = vmatpush3.bf16.msra.mxu1 %v1022_v44 }
 0x1af   : > { %1027 = vmatprep.subr.bf16.mxu1 %v1026_v47 }
 0x1b2   : > { %1029 = vmatpush3.bf16.msra.mxu1 %v1026_v47 }
 0x1b5   : > { %926 = vmatmul.mubr.f32.vlgmr.msra.gmra.mrb[0].mxu1 %v382_v22 }
 0x267   : > { %v857_v48 = vpop.f32.mrb[4].mxu0 }
 0x268   : > { %v488_v49 = vpop.f32.mrb[5].mxu0 }
 0x288   : > { %v927_v51 = vpop.f32.mrb[0].mxu1 }
 0x289   : > { %v1030_v53 = vadd.f32 %v927_v51, %v857_v48  ;;  %v656_v54 = vpop.f32.mrb[1].mxu1 }
 0x28a   : > { %v1031_v56 = vadd.f32 %v656_v54, %v488_v49 }
 0x28b   : > { %v675_v57 = vadd.f32 %v1030_v53, %v764_v52 }
 0x28c   : > { %v674_v58 = vadd.f32 %v1031_v56, %v764_v52 }
 0x28d   : > { %v677_v60 = vmax.f32 %v675_v57, 0.0 }
 0x28e   : > { %v676_v62 = vmax.f32 %v674_v58, 0.0 }
 0x28f   : > { %v679_v63 = vadd.f32 %v677_v60, %v379_v59 }
 0x290   : > { %v678_v0 = vadd.f32 %v676_v62, %v373_v61 }
 0x291   : > { %681 = vst.msk [vmem:[%s239_s8 + $0x8] sm:$0xff] %vm271_vm5, %v679_v63 }
 0x292   : > { %680 = vst.msk [vmem:[%s239_s8] sm:$0xff] %vm271_vm5, %v678_v0 }
 0x293 PF: > { %s16_s18 = sadd.s32 1, %s1097_s18  }
 0x294   : > { %p13_p3 = scmp.ge.s32.totalorder %s16_s18, 4  }
 0x296   :  { %15 = sbr.rel (!%p13_p3) target bundleno = 1 (0x1), region = 75 }
 0x29d   :  { %703 = vsyncpa [#allocation5], 1 }
 0x29e   :  { %705 = vsyncpa [#allocation5 + $0x1], 1 }

</bundles_post_ra>
